<compile_context>
chip_gen: v6e
topology: v6e:2x2x1
jax: 0.10.0
libtpu: 0.0.40
codegen_flags: <defaults>
</compile_context>

<pallas_src>
import functools

import jax
import jax.numpy as jnp
from jax import lax
from jax.experimental import pallas as pl
from jax.experimental.pallas import tpu as pltpu


DEFAULT_WEIGHT = (1.0, 1.3, 6.4, 0.0)  # module's default class weights


def weighted_nll_loss(pred, target, weight=None, *, tile_lanes=65536, num_parallel=2):
    """pred: (B, C) log-probs; target: (B,) int; weight: (num_classes,) with
    num_classes >= C (classes >= C behave like the module's appended zero
    log-prob column). Returns a scalar f32 loss."""
    if weight is None:
        weight = jnp.asarray(DEFAULT_WEIGHT, jnp.float32)
    weight = jnp.asarray(weight, jnp.float32)

    B, C = pred.shape
    num_classes = int(weight.shape[0])

    # Class-major layout: one cheap XLA transpose; kernel blocks are then
    # lane-dense (samples on lanes) and the DMA is contiguous.
    pred_t = jnp.asarray(pred, jnp.float32).T            # (C, B)
    tgt2d = jnp.asarray(target, jnp.int32).reshape(1, B)  # (1, B)

    # Tiling: tb samples (lanes) per grid step.
    tb = B if B <= tile_lanes else tile_lanes            # tile_lanes is a mult. of 128
    steps_total = pl.cdiv(B, tb)
    P = max(1, min(num_parallel, steps_total))            # parallel slices (v7x: 2 TCs)
    S = pl.cdiv(steps_total, P)                           # sequential steps per slice
    needs_mask = (P * S * tb) != B                         # ragged edge / dup blocks

    def kernel(w_ref, pred_ref, tgt_ref, num_out, den_out, acc_num, acc_den):
        p = pl.program_id(0)
        s = pl.program_id(1)

        @pl.when(s == 0)
        def _init():
            acc_num[...] = jnp.zeros_like(acc_num)
            acc_den[...] = jnp.zeros_like(acc_den)

        preds = pred_ref[...]                              # (C, tb) f32 log-probs
        tgt = tgt_ref[...]                                 # (1, tb) int32 class ids

        cls = lax.broadcasted_iota(jnp.int32, (C, tb), 0)  # class id per sublane row
        hit = cls == tgt                                   # (C, tb) one-hot mask

        # weight[t_i] per sample via a tiny select chain over SMEM scalars.
        w_sel = jnp.zeros((1, tb), jnp.float32)
        for c in range(num_classes):
            w_sel = jnp.where(tgt == c, w_ref[c], w_sel)

        if needs_mask:
            # Mask lanes beyond B (edge block or clamped duplicate block).
            j = p * pl.num_programs(1) + s                 # unclamped block index
            pos = j * tb + lax.broadcasted_iota(jnp.int32, (1, tb), 1)
            valid = pos < B
            hit = jnp.logical_and(hit, valid)
            w_sel = jnp.where(valid, w_sel, 0.0)

        # pred[i, t_i]; targets >= C hit no row -> 0 (the appended zero column).
        picked = jnp.sum(jnp.where(hit, preds, 0.0), axis=0, keepdims=True)  # (1, tb)

        acc_num[...] += w_sel * picked                     # pure elementwise per step
        acc_den[...] += w_sel

        @pl.when(s == pl.num_programs(1) - 1)
        def _finalize():
            num_out[...] = jnp.full((1, 1, 128), jnp.sum(acc_num[...]), jnp.float32)
            den_out[...] = jnp.full((1, 1, 128), jnp.sum(acc_den[...]), jnp.float32)

    def blk_idx(p, s):
        # Clamp so duplicate megacore steps never issue an OOB DMA; their
        # contribution is zeroed by the in-kernel position mask.
        return (0, jnp.minimum(p * S + s, steps_total - 1))

    cost = pl.CostEstimate(
        flops=30 * B,
        transcendentals=0,
        bytes_accessed=(C + 2) * B * 4 + num_classes * 4 + P * 2 * 128 * 4,
    )

    num_out, den_out = pl.pallas_call(
        kernel,
        out_shape=(
            jax.ShapeDtypeStruct((P, 1, 128), jnp.float32),   # per-core numerator
            jax.ShapeDtypeStruct((P, 1, 128), jnp.float32),   # per-core denominator
        ),
        grid=(P, S),
        in_specs=[
            pl.BlockSpec(memory_space=pltpu.MemorySpace.SMEM),   # weights (tiny)
            pl.BlockSpec((C, tb), blk_idx),                      # pred tile (lane-dense)
            pl.BlockSpec((1, tb), blk_idx),                      # target tile
        ],
        out_specs=(
            pl.BlockSpec((1, 1, 128), lambda p, s: (p, 0, 0)),
            pl.BlockSpec((1, 1, 128), lambda p, s: (p, 0, 0)),
        ),
        scratch_shapes=[
            pltpu.VMEM((1, tb), jnp.float32),   # numerator partials (per lane)
            pltpu.VMEM((1, tb), jnp.float32),   # denominator partials (per lane)
        ],
        compiler_params=pltpu.CompilerParams(
            dimension_semantics=("parallel", "arbitrary"),
        ),
        cost_estimate=cost,
    )(weight, pred_t, tgt2d)

    num = jnp.sum(num_out[:, 0, 0])
    den = jnp.sum(den_out[:, 0, 0])
    return -num / den


def reference(pred, target, weight):
    # Pure-JAX reference mirroring the PyTorch module.
    B = pred.shape[0]
    pred_pad = jnp.concatenate([pred, jnp.zeros((B, 1), pred.dtype)], axis=-1)
    picked = jnp.take_along_axis(pred_pad, target[:, None], axis=1)[:, 0]
    w_sel = weight[target]
    return -jnp.sum(w_sel * picked) / jnp.sum(w_sel)


if __name__ == "__main__":
    key = jax.random.PRNGKey(0)
    k_logits, k_tgt = jax.random.split(key)

    B, C = 200, 3  # SurfaceNet: 3 predicted classes + appended zero column (class 3)
    logits = jax.random.normal(k_logits, (B, C), dtype=jnp.float32)
    pred = jax.nn.log_softmax(logits, axis=-1)             # nll_loss expects log-probs
    target = jax.random.randint(k_tgt, (B,), 0, 4, dtype=jnp.int32)
    weight = jnp.array(DEFAULT_WEIGHT, dtype=jnp.float32)

    ref = reference(pred, target, weight)

    # 1) Default path: single lane-dense block, one parallel slice.
    loss_fn = jax.jit(weighted_nll_loss)
    loss = jax.block_until_ready(loss_fn(pred, target, weight))
    assert loss.shape == ()
    assert jnp.allclose(loss, ref, atol=1e-5, rtol=1e-5), (loss, ref)

    # 2) Multi-block path: small tiles to exercise the parallel axis, the edge
    #    mask, and the cross-step VMEM accumulation.
    loss_fn_tiled = jax.jit(functools.partial(weighted_nll_loss,
                                              tile_lanes=128, num_parallel=2))
    loss_t = jax.block_until_ready(loss_fn_tiled(pred, target, weight))
    assert jnp.allclose(loss_t, ref, atol=1e-5, rtol=1e-5), (loss_t, ref)

    print("KERNEL_OK")
</pallas_src>

<mosaic_0001>
module attributes {stable_mosaic.version = 11 : i64} {
  func.func @kernel(%arg0: i32, %arg1: i32, %arg2: memref<4xf32, #tpu.memory_space<smem>>, %arg3: memref<3x200xf32, #tpu.memory_space<vmem>>, %arg4: memref<1x200xi32, #tpu.memory_space<vmem>>, %arg5: memref<1x1x128xf32, #tpu.memory_space<vmem>>, %arg6: memref<1x1x128xf32, #tpu.memory_space<vmem>>, %arg7: memref<1x200xf32, #tpu.memory_space<vmem>>, %arg8: memref<1x200xf32, #tpu.memory_space<vmem>>) attributes {dimension_semantics = [#tpu.dimension_semantics<parallel>, #tpu.dimension_semantics<arbitrary>], iteration_bounds = array<i64: 1, 1>, scalar_prefetch = 0 : i64, scratch_operands = 2 : i64, tpu.core_type = #tpu.core_type<tc>, window_params = [{transform_indices = @transform_0, window_bounds = array<i64: 4>}, {transform_indices = @transform_1, window_bounds = array<i64: 3, 200>}, {transform_indices = @transform_2, window_bounds = array<i64: 1, 200>}, {transform_indices = @transform_3, window_bounds = array<i64: 1, 1, 128>}, {transform_indices = @transform_4, window_bounds = array<i64: 1, 1, 128>}]} {
    %c0_i32 = arith.constant 0 : i32
    %0 = arith.cmpi eq, %arg1, %c0_i32 : i32
    %1 = arith.extui %0 : i1 to i32
    %c0_i32_0 = arith.constant 0 : i32
    %2 = arith.cmpi ne, %1, %c0_i32_0 : i32
    scf.if %2 {
      %cst_18 = arith.constant 0.000000e+00 : f32
      %43 = vector.broadcast %cst_18 : f32 to vector<1x200xf32>
      %c0_19 = arith.constant 0 : index
      %c0_20 = arith.constant 0 : index
      %44 = vector.load %arg7[%c0_19, %c0_20] : memref<1x200xf32, #tpu.memory_space<vmem>>, vector<1x200xf32>
      tpu.vector_store %arg7[%c0_19, %c0_20], %43 {strides = array<i32>} : memref<1x200xf32, #tpu.memory_space<vmem>>, vector<1x200xf32>,
      %cst_21 = arith.constant 0.000000e+00 : f32
      %45 = vector.broadcast %cst_21 : f32 to vector<1x200xf32>
      %c0_22 = arith.constant 0 : index
      %c0_23 = arith.constant 0 : index
      %46 = vector.load %arg8[%c0_22, %c0_23] : memref<1x200xf32, #tpu.memory_space<vmem>>, vector<1x200xf32>
      tpu.vector_store %arg8[%c0_22, %c0_23], %45 {strides = array<i32>} : memref<1x200xf32, #tpu.memory_space<vmem>>, vector<1x200xf32>,
    } else {
    }
    %c0 = arith.constant 0 : index
    %c0_1 = arith.constant 0 : index
    %3 = vector.load %arg3[%c0, %c0_1] : memref<3x200xf32, #tpu.memory_space<vmem>>, vector<3x200xf32>
    %c0_2 = arith.constant 0 : index
    %c0_3 = arith.constant 0 : index
    %4 = vector.load %arg4[%c0_2, %c0_3] : memref<1x200xi32, #tpu.memory_space<vmem>>, vector<1x200xi32>
    %5 = tpu.iota {dimensions = array<i32: 0>} : vector<3x200xi32>
    %6 = vector.broadcast %4 : vector<1x200xi32> to vector<3x200xi32>
    %7 = arith.cmpi eq, %5, %6 : vector<3x200xi32>
    %cst = arith.constant 0.000000e+00 : f32
    %8 = vector.broadcast %cst : f32 to vector<1x200xf32>
    %c0_i32_4 = arith.constant 0 : i32
    %9 = vector.broadcast %c0_i32_4 : i32 to vector<1x200xi32>
    %10 = arith.cmpi eq, %4, %9 : vector<1x200xi32>
    %c0_5 = arith.constant 0 : index
    %11 = memref.load %arg2[%c0_5] : memref<4xf32, #tpu.memory_space<smem>>
    %12 = vector.broadcast %11 : f32 to vector<1x200xf32>
    %13 = arith.select %10, %12, %8 : vector<1x200xi1>, vector<1x200xf32>
    %c1_i32 = arith.constant 1 : i32
    %14 = vector.broadcast %c1_i32 : i32 to vector<1x200xi32>
    %15 = arith.cmpi eq, %4, %14 : vector<1x200xi32>
    %c1 = arith.constant 1 : index
    %16 = memref.load %arg2[%c1] : memref<4xf32, #tpu.memory_space<smem>>
    %17 = vector.broadcast %16 : f32 to vector<1x200xf32>
    %18 = arith.select %15, %17, %13 : vector<1x200xi1>, vector<1x200xf32>
    %c2_i32 = arith.constant 2 : i32
    %19 = vector.broadcast %c2_i32 : i32 to vector<1x200xi32>
    %20 = arith.cmpi eq, %4, %19 : vector<1x200xi32>
    %c2 = arith.constant 2 : index
    %21 = memref.load %arg2[%c2] : memref<4xf32, #tpu.memory_space<smem>>
    %22 = vector.broadcast %21 : f32 to vector<1x200xf32>
    %23 = arith.select %20, %22, %18 : vector<1x200xi1>, vector<1x200xf32>
    %c3_i32 = arith.constant 3 : i32
    %24 = vector.broadcast %c3_i32 : i32 to vector<1x200xi32>
    %25 = arith.cmpi eq, %4, %24 : vector<1x200xi32>
    %c3 = arith.constant 3 : index
    %26 = memref.load %arg2[%c3] : memref<4xf32, #tpu.memory_space<smem>>
    %27 = vector.broadcast %26 : f32 to vector<1x200xf32>
    %28 = arith.select %25, %27, %23 : vector<1x200xi1>, vector<1x200xf32>
    %cst_6 = arith.constant 0.000000e+00 : f32
    %29 = vector.broadcast %cst_6 : f32 to vector<3x200xf32>
    %30 = arith.select %7, %3, %29 : vector<3x200xi1>, vector<3x200xf32>
    %cst_7 = arith.constant dense<0.000000e+00> : vector<200xf32>
    %31 = vector.multi_reduction <add>, %30, %cst_7 [0] : vector<3x200xf32> to vector<200xf32>
    %32 = vector.shape_cast %31 : vector<200xf32> to vector<1x200xf32>
    %c0_8 = arith.constant 0 : index
    %c0_9 = arith.constant 0 : index
    %33 = vector.load %arg7[%c0_8, %c0_9] : memref<1x200xf32, #tpu.memory_space<vmem>>, vector<1x200xf32>
    %34 = arith.mulf %28, %32 : vector<1x200xf32>
    %35 = arith.addf %33, %34 : vector<1x200xf32>
    %c0_10 = arith.constant 0 : index
    %c0_11 = arith.constant 0 : index
    %36 = vector.load %arg7[%c0_10, %c0_11] : memref<1x200xf32, #tpu.memory_space<vmem>>, vector<1x200xf32>
    tpu.vector_store %arg7[%c0_10, %c0_11], %35 {strides = array<i32>} : memref<1x200xf32, #tpu.memory_space<vmem>>, vector<1x200xf32>,
    %c0_12 = arith.constant 0 : index
    %c0_13 = arith.constant 0 : index
    %37 = vector.load %arg8[%c0_12, %c0_13] : memref<1x200xf32, #tpu.memory_space<vmem>>, vector<1x200xf32>
    %38 = arith.addf %37, %28 : vector<1x200xf32>
    %c0_14 = arith.constant 0 : index
    %c0_15 = arith.constant 0 : index
    %39 = vector.load %arg8[%c0_14, %c0_15] : memref<1x200xf32, #tpu.memory_space<vmem>>, vector<1x200xf32>
    tpu.vector_store %arg8[%c0_14, %c0_15], %38 {strides = array<i32>} : memref<1x200xf32, #tpu.memory_space<vmem>>, vector<1x200xf32>,
    %c0_i32_16 = arith.constant 0 : i32
    %40 = arith.cmpi eq, %arg1, %c0_i32_16 : i32
    %41 = arith.extui %40 : i1 to i32
    %c0_i32_17 = arith.constant 0 : i32
    %42 = arith.cmpi ne, %41, %c0_i32_17 : i32
    scf.if %42 {
      %c0_18 = arith.constant 0 : index
      %c0_19 = arith.constant 0 : index
      %43 = vector.load %arg7[%c0_18, %c0_19] : memref<1x200xf32, #tpu.memory_space<vmem>>, vector<1x200xf32>
      %44 = vector.shape_cast %43 : vector<1x200xf32> to vector<1x1x200xf32>
      %cst_20 = arith.constant dense<0.000000e+00> : vector<1xf32>
      %45 = vector.multi_reduction <add>, %44, %cst_20 [1, 2] : vector<1x1x200xf32> to vector<1xf32>
      %46 = vector.shape_cast %45 : vector<1xf32> to vector<1x1x1xf32>
      %47 = vector.extract %46[0, 0, 0] : f32 from vector<1x1x1xf32>
      %48 = vector.broadcast %47 : f32 to vector<1x1x128xf32>
      %c0_21 = arith.constant 0 : index
      %c0_22 = arith.constant 0 : index
      %c0_23 = arith.constant 0 : index
      %49 = vector.load %arg5[%c0_21, %c0_22, %c0_23] : memref<1x1x128xf32, #tpu.memory_space<vmem>>, vector<1x1x128xf32>
      tpu.vector_store %arg5[%c0_21, %c0_22, %c0_23], %48 {strides = array<i32>} : memref<1x1x128xf32, #tpu.memory_space<vmem>>, vector<1x1x128xf32>,
      %c0_24 = arith.constant 0 : index
      %c0_25 = arith.constant 0 : index
      %50 = vector.load %arg8[%c0_24, %c0_25] : memref<1x200xf32, #tpu.memory_space<vmem>>, vector<1x200xf32>
      %51 = vector.shape_cast %50 : vector<1x200xf32> to vector<1x1x200xf32>
      %cst_26 = arith.constant dense<0.000000e+00> : vector<1xf32>
      %52 = vector.multi_reduction <add>, %51, %cst_26 [1, 2] : vector<1x1x200xf32> to vector<1xf32>
      %53 = vector.shape_cast %52 : vector<1xf32> to vector<1x1x1xf32>
      %54 = vector.extract %53[0, 0, 0] : f32 from vector<1x1x1xf32>
      %55 = vector.broadcast %54 : f32 to vector<1x1x128xf32>
      %c0_27 = arith.constant 0 : index
      %c0_28 = arith.constant 0 : index
      %c0_29 = arith.constant 0 : index
      %56 = vector.load %arg6[%c0_27, %c0_28, %c0_29] : memref<1x1x128xf32, #tpu.memory_space<vmem>>, vector<1x1x128xf32>
      tpu.vector_store %arg6[%c0_27, %c0_28, %c0_29], %55 {strides = array<i32>} : memref<1x1x128xf32, #tpu.memory_space<vmem>>, vector<1x1x128xf32>,
    } else {
    }
    return
  }
  func.func @transform_0(%arg0: i32, %arg1: i32) -> i32 {
    %c0_i32 = arith.constant 0 : i32
    %c0_i32_0 = arith.constant 0 : i32
    return %c0_i32 : i32
  }
  func.func @transform_1(%arg0: i32, %arg1: i32) -> (i32, i32) {
    %c1_i32 = arith.constant 1 : i32
    %0 = arith.muli %arg0, %c1_i32 : i32
    %1 = arith.addi %0, %arg1 : i32
    %c0_i32 = arith.constant 0 : i32
    %2 = arith.minsi %1, %c0_i32 : i32
    %c0_i32_0 = arith.constant 0 : i32
    %c0_i32_1 = arith.constant 0 : i32
    return %c0_i32_0, %2 : i32, i32
  }
  func.func @transform_2(%arg0: i32, %arg1: i32) -> (i32, i32) {
    %c1_i32 = arith.constant 1 : i32
    %0 = arith.muli %arg0, %c1_i32 : i32
    %1 = arith.addi %0, %arg1 : i32
    %c0_i32 = arith.constant 0 : i32
    %2 = arith.minsi %1, %c0_i32 : i32
    %c0_i32_0 = arith.constant 0 : i32
    %c0_i32_1 = arith.constant 0 : i32
    return %c0_i32_0, %2 : i32, i32
  }
  func.func @transform_3(%arg0: i32, %arg1: i32) -> (i32, i32, i32) {
    %c0_i32 = arith.constant 0 : i32
    %c0_i32_0 = arith.constant 0 : i32
    %c0_i32_1 = arith.constant 0 : i32
    return %arg0, %c0_i32, %c0_i32_0 : i32, i32, i32
  }
  func.func @transform_4(%arg0: i32, %arg1: i32) -> (i32, i32, i32) {
    %c0_i32 = arith.constant 0 : i32
    %c0_i32_0 = arith.constant 0 : i32
    %c0_i32_1 = arith.constant 0 : i32
    return %arg0, %c0_i32, %c0_i32_0 : i32, i32, i32
  }
}

</mosaic_0001>

<bundles_post_ra>
// kernel: weighted_nll_loss.1
= control target key start
LH: loop header
LB: loop body
LE: loop exit
PB: predicated region body
PF: predicated region fallthrough
CT: control target
= control target key end

     0   :  { %10 = vsyncpa [#allocation6], 0  ;;  %s357_s0 = inlined_call_operand.vmem [shape: f32[4], index: 0, kind: input, shape index: {}]   ;;  %s358_s1 = inlined_call_operand.hbm [shape: f32[3,200], index: 1, kind: input, shape index: {}]   ;;  %s359_s2 = inlined_call_operand.vmem [shape: s32[1,200], index: 2, kind: input, shape index: {}]   ;;  %s360_s3 = inlined_call_operand.vmem [shape: f32[1,1,128], index: 3, kind: output, shape index: {0}]   ;;  %s361_s4 = inlined_call_operand.vmem [shape: f32[1,1,128], index: 4, kind: output, shape index: {1}]  }
   0x1   :  { %s18_s17 = sshll.u32 %s357_s0, 4  ;;  %s19_s17 = int_to_ptr.vmem [resolvable:$true] %s18_s17 }
   0x2   :  { %11 = vsyncpa [#allocation5], 0  ;;  %s254_s18 = scalar_lea.vmem %s19_s17, 16  ;;  %p259_p1 = scmp.lt.s32.totalorder %s19_s17, %s19_s17 }
   0x3   :  { %p255_p0 = scmp.ne.s32.totalorder %s19_s17, %s254_s18  ;;  %p260_p2 = scmp.lt.s32.totalorder %s254_s18, %s254_s18 }
   0x5   :  { %p261_p3 = por %p260_p2, %p259_p1 }
   0x7   :  { %p262_p4 = pnand %p261_p3, %p255_p0 }
   0x9   :  { %265 = shalt.err (!%p262_p4)
}
   0xa   :  { %s290_s19 = smov [#allocation4]   ;;  %s291_s20 = smov [#allocation7]  }
   0xb   :  { %21 = dma.vmem_to_smem %s19_s17, 16, %s290_s19, [#allocation6]  }
   0xc   :  { %s34_s21 = sshll.u32 %s291_s20, 4  ;;  %s35_s21 = int_to_ptr.vmem [resolvable:$true] %s34_s21 }
   0xd   :  { %s274_s22 = scalar_lea.vmem %s35_s21, 128  ;;  %p279_p6 = scmp.lt.s32.totalorder %s35_s21, %s35_s21 }
   0xe   :  { %p275_p5 = scmp.ne.s32.totalorder %s35_s21, %s274_s22  ;;  %p280_p7 = scmp.lt.s32.totalorder %s274_s22, %s274_s22 }
  0x10   :  { %p281_p8 = por %p280_p7, %p279_p6 }
  0x12   :  { %p282_p9 = pnand %p281_p8, %p275_p5 }
  0x14   :  { %285 = shalt.err (!%p282_p9)
}
  0x15   :  { %37 = dma.hbm_to_vmem [thread:$0]  %s358_s1, 128, %s35_s21, [#allocation5]  }
  0x16   :  { %286 = dma.done.wait [#allocation6], 16  }
  0x17   :  { %287 = vsyncadd [#allocation6], 4294967280 }
  0x18   :  { %288 = dma.done.wait [#allocation5], 128  }
  0x19   :  { %289 = vsyncadd [#allocation5], 4294967168 }
  0x1a   :  { %57 = sfence }
  0x1b   :  { %v84_v0 = vlaneseq  ;;  %s105_s24 = sld [smem:[#allocation4]]  ;;  %v90_v2 = vld [vmem:[#allocation7] sm:$0x77]  ;;  %v292_v4 = vmov 0.0   ;;  %v91_v5 = vld [vmem:[%s359_s2] sm:$0x3] }
  0x1c   :  { %s242_s25 = sld [smem:[#allocation4 + $0x1]]  ;;  %vm104_vm1 = vcmp.eq.s32.totalorder %v91_v5, 0  ;;  %v121_v8 = vcombine.high %v90_v2, %v90_v2  ;;  %vm125_vm2 = vcmask 1042432   ;;  %vm108_vm3 = vcmp.eq.s32.totalorder %v91_v5, 1 }
  0x1d   :  { %vm325_vm0 = vcmp.lt.s32.totalorder %v84_v0, 200  ;;  %v93_v3 = vshrl.u32 %v84_v0, 7  ;;  %s243_s27 = sld [smem:[#allocation4 + $0x2]]  ;;  %vm112_vm4 = vcmp.eq.s32.totalorder %v91_v5, 2  ;;  %vm116_vm5 = vcmp.eq.s32.totalorder %v91_v5, 3 }
  0x1e   :  { %88 = vst.msk [vmem:[#allocation2] sm:$0x3] %vm325_vm0, %v292_v4  ;;  %89 = vst.msk [vmem:[#allocation3] sm:$0x3] %vm325_vm0, %v292_v4  ;;  %s244_s28 = sld [smem:[#allocation4 + $0x3]]  ;;  %vm133_vm6 = vcmask 583680  }
  0x1f   :  { %v336_v6 = vsub.s32 0, %v93_v3  ;;  %v338_v7 = vsub.s32 1, %v93_v3  ;;  %v293_v29 = vmov 1966171168   ;;  %vm185_vm9 = vcmask 1040384  }
  0x20   :  { %v146_v30 = vunpack.c.l.s4 %v293_v29  ;;  %vm187_vm10 = vcmask 581632  }
  0x21   :  { %v97_v9 = vrot.slane %v91_v5, %v336_v6  ;;  %v101_v10 = vrot.slane %v91_v5, %v338_v7  ;;  %v106_v11 = vstv %s105_s24 }
  0x22   :  { %v107_v12 = vsel %vm104_vm1, %v106_v11, 0.0  ;;  %v110_v13 = vstv %s242_s25  ;;  %v147_v35 = vunpack.c.0.s8 %v146_v30 }
  0x23   :  { %vm102_vm7 = vcmp.eq.s32.totalorder %v93_v3, %v97_v9  ;;  %vm103_vm8 = vcmp.eq.s32.totalorder %v93_v3, %v101_v10  ;;  %v111_v14 = vsel %vm108_vm3, %v110_v13, %v107_v12  ;;  %v114_v15 = vstv %s243_s27 }
  0x24   :  { %v123_v16 = vsel %vm102_vm7, %v90_v2, 0.0  ;;  %v124_v17 = vsel %vm103_vm8, %v121_v8, 0.0  ;;  %v115_v18 = vsel %vm112_vm4, %v114_v15, %v111_v14  ;;  %v118_v19 = vstv %s244_s28 }
  0x25   :  { %v126_v20 = vsel %vm125_vm2, %v123_v16, 0.0  ;;  %v134_v21 = vsel %vm133_vm6, %v124_v17, 0.0  ;;  %v167_v22 = vld [vmem:[#allocation3] sm:$0x3]  ;;  %v119_v23 = vsel %vm116_vm5, %v118_v19, %v115_v18  ;;  %v150_v40 = vsub.s32 %v147_v35, %v93_v3  ;;  %v141_v44 = vld [vmem:[#allocation2] sm:$0x3] }
  0x26   :  { %v127_v24 = vrot.slane %v126_v20, 4  ;;  %v135_v25 = vrot.slane %v134_v21, 4  ;;  %v168_v26 = vadd.f32 %v167_v22, %v119_v23 }
  0x28   :  { %v128_v27 = vadd.f32 %v127_v24, %v126_v20  ;;  %v136_v28 = vadd.f32 %v135_v25, %v134_v21  ;;  %169 = vst.msk [vmem:[#allocation3] sm:$0x3] %vm325_vm0, %v168_v26 }
  0x2a   :  { %v129_v31 = vrot.slane %v128_v27, 2  ;;  %v137_v32 = vrot.slane %v136_v28, 2 }
  0x2c   :  { %v130_v33 = vadd.f32 %v129_v31, %v128_v27  ;;  %v138_v34 = vadd.f32 %v137_v32, %v136_v28 }
  0x2e   :  { %v131_v36 = vrot.slane %v130_v33, 1  ;;  %v139_v37 = vrot.slane %v138_v34, 1 }
  0x2f   :  { %v201_v47 = vld [vmem:[#allocation3] sm:$0x3] }
  0x30   :  { %v132_v38 = vadd.f32 %v131_v36, %v130_v33  ;;  %v140_v39 = vadd.f32 %v139_v37, %v138_v34  ;;  %v206_v48 = vrot.slane %v201_v47, %v336_v6  ;;  %v210_v49 = vrot.slane %v201_v47, %v338_v7 }
  0x32   :  { %v144_v41 = vcombine.low %v132_v38, %v140_v39  ;;  %v213_v55 = vsel %vm185_vm9, %v206_v48, 0.0  ;;  %v214_v56 = vsel %vm187_vm10, %v210_v49, 0.0 }
  0x33   :  { %v215_v58 = vadd.f32 %v214_v56, %v213_v55 }
  0x34   :  { %v151_v42 = vrot.slane %v144_v41, %v150_v40 }
  0x36   :  { %v158_v43 = vrot.slane %v151_v42, %v150_v40 }
  0x38   :  { %v160_v45 = vmul.f32 %v158_v43, %v119_v23 }
  0x3a   :  { %v161_v46 = vadd.f32 %v160_v45, %v141_v44 }
  0x3c   :  { %166 = vst.msk [vmem:[#allocation2] sm:$0x3] %vm325_vm0, %v161_v46 }
  0x43   :  { %v173_v50 = vld [vmem:[#allocation2] sm:$0x3] }
  0x44   :  { %v178_v51 = vrot.slane %v173_v50, %v336_v6  ;;  %v182_v52 = vrot.slane %v173_v50, %v338_v7 }
  0x46   :  { %v186_v53 = vsel %vm185_vm9, %v178_v51, 0.0  ;;  %v188_v54 = vsel %vm187_vm10, %v182_v52, 0.0 }
  0x47   :  { %v189_v57 = vadd.f32 %v188_v54, %v186_v53 }
  0x49   :  { %190 = vadd.xlane.f32.xlu0 %v189_v57 }
  0x4d   :  { %216 = vadd.xlane.f32.xlu0 %v215_v58 }
  0xd2   :  { %v191_v59 = vpop.xlane.xlu0 %190 }
  0xd3   :  { %v192_v60 = vrot.slane %v191_v59, 4 }
  0xd5   :  { %v193_v61 = vadd.f32 %v192_v60, %v191_v59 }
  0xd6   :  { %v217_v62 = vpop.xlane.xlu0 %216 }
  0xd7   :  { %v194_v63 = vrot.slane %v193_v61, 2  ;;  %v218_v0 = vrot.slane %v217_v62, 4 }
  0xd9   :  { %v219_v1 = vadd.f32 %v218_v0, %v217_v62  ;;  %v195_v2 = vadd.f32 %v194_v63, %v193_v61 }
  0xdb   :  { %v220_v3 = vrot.slane %v219_v1, 2  ;;  %v196_v4 = vrot.slane %v195_v2, 1 }
  0xdd   :  { %v221_v5 = vadd.f32 %v220_v3, %v219_v1  ;;  %v197_v6 = vadd.f32 %v196_v4, %v195_v2 }
  0xdf   :  { %245 = vpush %v197_v6  ;;  %v222_v7 = vrot.slane %v221_v5, 1 }
  0xe1   :  { %v223_v8 = vadd.f32 %v222_v7, %v221_v5 }
  0xe3   :  { %247 = vpush %v223_v8 }
 0x110   :  { %s246_s2 = spop %245 }
 0x111   :  { %v199_v9 = vstv %s246_s2 }
 0x112   :  { %200 = vst [vmem:[%s360_s3] sm:$0x1] %v199_v9 }
 0x114   :  { %s248_s5 = spop %247 }
 0x115   :  { %v225_v10 = vstv %s248_s5 }
 0x116   :  { %226 = vst [vmem:[%s361_s4] sm:$0x1] %v225_v10 }
 0x117   :  { %235 = vsyncpa [#allocation5], 1 }
 0x118   :  { %236 = vsyncpa [#allocation6], 1 }

</bundles_post_ra>
